<compile_context>
chip_gen: v7x
topology: tpu7x:2x2x1
jax: 0.10.0
libtpu: 0.0.40
codegen_flags: <defaults>
</compile_context>

<pallas_src>
import itertools
import math
from functools import reduce

import jax
import jax.numpy as jnp
from jax.experimental import pallas as pl
from jax.experimental.pallas import tpu as pltpu


class BroadcastCat:
    """Concatenate a sequence of arrays along a dimension with broadcasting
    (LCM-repeat) along all event dimensions except `dim`.  Mirrors
    actorch.models.modules.broadcast_cat.BroadcastCat."""

    def __init__(self, in_shapes, dim: int = 0, min_pallas_bytes: int = 64 * 1024):
        max_event_ndims = max([len(shape) for shape in in_shapes])
        max_event_ndims = max(max_event_ndims, 1)
        if (dim < -max_event_ndims or dim >= max_event_ndims
                or not float(dim).is_integer()):
            raise IndexError(
                f"`dim` ({dim}) must be in the integer interval "
                f"[-{max_event_ndims}, {max_event_ndims})")
        self.in_shapes = [tuple(s) for s in in_shapes]
        self.dim = (int(dim) + max_event_ndims) % max_event_ndims
        self._max_event_ndims = max_event_ndims
        self.min_pallas_bytes = int(min_pallas_bytes)

        expanded_in_shapes = [
            shape + (1,) * (max_event_ndims - len(shape))
            for shape in self.in_shapes
        ]
        target_in_shape = [
            reduce(lambda x, y: x * y // math.gcd(x, y), sizes)
            if i != self.dim else -1
            for i, sizes in enumerate(zip(*expanded_in_shapes))
        ]
        self._expanded_in_shapes = expanded_in_shapes
        self._repeat_shapes = [
            tuple(
                target_size // expanded_size if target_size != -1 else 1
                for target_size, expanded_size in zip(target_in_shape,
                                                      expanded_in_shape))
            for expanded_in_shape in expanded_in_shapes
        ]

    # ---- Pallas kernel -----------------------------------------------------
    @staticmethod
    def _make_kernel(block_shapes, reps_list, cat_axis, cat_offsets, cat_sizes,
                     out_dtype):
        n_in = len(block_shapes)

        def kernel(*refs):
            out_ref = refs[n_in]
            for i in range(n_in):
                shape = block_shapes[i]
                reps = reps_list[i]
                x = refs[i][...]
                # Cast once, on the smallest (un-repeated) representation.
                if x.dtype != out_dtype:
                    x = x.astype(out_dtype)
                # Repeats along size-1 axes are pure broadcasts (free-ish).
                bshape = tuple(r if (s == 1 and r > 1) else s
                               for s, r in zip(shape, reps))
                if bshape != shape:
                    x = jnp.broadcast_to(x, bshape)
                # Genuine tiling (size>1, repeat>1): write the same resident
                # block to several statically-offset output slabs instead of
                # building a concatenated copy in VMEM.
                tiled = [(ax, s, r)
                         for ax, (s, r) in enumerate(zip(shape, reps))
                         if s > 1 and r > 1]
                ndim = len(shape)
                for combo in itertools.product(*[range(r) for _, _, r in tiled]):
                    idx = [slice(None)] * ndim
                    idx[cat_axis] = slice(cat_offsets[i],
                                          cat_offsets[i] + cat_sizes[i])
                    for (ax, s, _), j in zip(tiled, combo):
                        idx[ax] = slice(j * s, (j + 1) * s)
                    out_ref[tuple(idx)] = x

        return kernel

    # ---- tiny-input fallback (XLA fuses tile+concat; no launch overhead) ----
    def _jax_fallback(self, inputs, batch_ndims):
        expanded = []
        for i, x in enumerate(inputs):
            pad = self._max_event_ndims - len(self.in_shapes[i])
            if pad:
                x = x.reshape(x.shape + (1,) * pad)
            reps = (1,) * batch_ndims + self._repeat_shapes[i]
            expanded.append(jnp.tile(x, reps))
        return jnp.concatenate(expanded, axis=batch_ndims + self.dim)

    # ---- forward ------------------------------------------------------------
    def __call__(self, inputs):
        inputs = list(inputs)
        if len(inputs) == 1:
            return inputs[0]

        # Same semantics as the torch module: batch rank from the first input.
        batch_ndims = inputs[0].ndim - len(self.in_shapes[0])
        batch_shape = tuple(inputs[0].shape[:batch_ndims])
        out_dtype = jnp.result_type(*[x.dtype for x in inputs])

        # Internal layout: flatten batch dims to one leading axis and force the
        # padded event rank to >= 2 so the batch axis never sits in the
        # (sublane, lane) position of a BlockSpec.
        extra = 1 if self._max_event_ndims < 2 else 0
        padded_events = [
            shape + (1,) * (self._max_event_ndims - len(shape) + extra)
            for shape in self.in_shapes
        ]
        reps_list = [(1,) + reps + (1,) * extra for reps in self._repeat_shapes]
        ev_rank = self._max_event_ndims + extra
        cat_axis = 1 + self.dim
        cat_sizes = [pe[self.dim] for pe in padded_events]
        cat_offsets = []
        total_cat = 0
        for s in cat_sizes:
            cat_offsets.append(total_cat)
            total_cat += s
        out_event = tuple(
            total_cat if ax == self.dim
            else padded_events[0][ax] * reps_list[0][1 + ax]
            for ax in range(ev_rank))
        out_logical_shape = batch_shape + out_event[:self._max_event_ndims]

        B_total = 1
        for s in batch_shape:
            B_total *= s

        out_bytes = (B_total * math.prod(out_event)
                     * jnp.dtype(out_dtype).itemsize)
        if B_total == 0 or out_bytes < self.min_pallas_bytes:
            # KB-scale: pallas_call dispatch overhead dominates the work.
            return self._jax_fallback(inputs, batch_ndims)

        xs = [x.reshape((B_total,) + pe)
              for x, pe in zip(inputs, padded_events)]

        # Batch block: largest divisor of B_total with per-step working set
        # <= ~4 MiB (double-buffered headroom even on v5e's 16 MiB scoped
        # default / v7x's 64 MiB physical), preferring >= 4 grid steps so the
        # pipeline overlaps DMA and both v7x TensorCores get work.
        per_batch_bytes = sum(
            math.prod(pe) * x.dtype.itemsize
            for x, pe in zip(inputs, padded_events)
        ) + math.prod(out_event) * jnp.dtype(out_dtype).itemsize
        budget = 4 * 1024 * 1024
        fitting = [d for d in range(1, B_total + 1)
                   if B_total % d == 0 and d * per_batch_bytes <= budget] or [1]
        preferred = ([d for d in fitting if B_total // d >= 4]
                     or [d for d in fitting if B_total // d >= 2]
                     or fitting)
        bb = max(preferred)
        grid = (B_total // bb,)

        block_shapes = [(bb,) + pe for pe in padded_events]
        out_block = (bb,) + out_event

        def _bmap(rank):
            zeros = (0,) * (rank - 1)
            return lambda b: (b,) + zeros

        kernel = self._make_kernel(block_shapes, reps_list, cat_axis,
                                   cat_offsets, cat_sizes, out_dtype)

        out = pl.pallas_call(
            kernel,
            out_shape=jax.ShapeDtypeStruct((B_total,) + out_event, out_dtype),
            grid_spec=pltpu.PrefetchScalarGridSpec(
                num_scalar_prefetch=0,
                grid=grid,
                in_specs=[pl.BlockSpec(bs, _bmap(len(bs)))
                          for bs in block_shapes],
                out_specs=pl.BlockSpec(out_block, _bmap(len(out_block))),
            ),
            compiler_params=pltpu.CompilerParams(
                dimension_semantics=("parallel",),
                vmem_limit_bytes=32 * 1024 * 1024,
            ),
        )(*xs)

        return out.reshape(out_logical_shape)


# Pure-JAX reference for verification (outside the kernel).
def _reference(module: BroadcastCat, inputs):
    if len(inputs) == 1:
        return inputs[0]
    batch_ndims = inputs[0].ndim - len(module.in_shapes[0])
    expanded = []
    for i, x in enumerate(inputs):
        pad = module._max_event_ndims - len(module.in_shapes[i])
        if pad:
            x = x.reshape(x.shape + (1,) * pad)
        reps = (1,) * batch_ndims + module._repeat_shapes[i]
        expanded.append(jnp.tile(x, reps))
    return jnp.concatenate(expanded, axis=batch_ndims + module.dim)


if __name__ == "__main__":
    key = jax.random.PRNGKey(0)
    ks = jax.random.split(key, 8)

    # ---- Case 1: tiny inputs -> size-based dispatch takes the pure-JAX path.
    m1 = BroadcastCat([(4, 16), (8, 8), (2,)], dim=0)
    a1 = jax.random.normal(ks[0], (2, 4, 16), dtype=jnp.float32)
    a2 = jax.random.normal(ks[1], (2, 8, 8), dtype=jnp.float32)
    a3 = jax.random.normal(ks[2], (2, 2), dtype=jnp.float32)
    o1 = jax.block_until_ready(m1([a1, a2, a3]))
    r1 = _reference(m1, [a1, a2, a3])
    assert o1.shape == (2, 14, 16), o1.shape
    assert jnp.allclose(o1, r1), "fallback path mismatch"

    # ---- Case 2: Pallas path; size-1 repeat (broadcast) + padded event dims.
    #   expanded -> (8,128), (4,64), (16,1); LCM along non-cat dim 1 is 128
    #   repeats  -> (1,1), (1,2), (1,128); output event shape (28, 128)
    m2 = BroadcastCat([(8, 128), (4, 64), (16,)], dim=0)
    b1 = jax.random.normal(ks[3], (16, 8, 128), dtype=jnp.float32)
    b2 = jax.random.normal(ks[4], (16, 4, 64), dtype=jnp.float32)
    b3 = jax.random.normal(ks[5], (16, 16), dtype=jnp.float32)
    o2 = jax.block_until_ready(m2([b1, b2, b3]))
    r2 = _reference(m2, [b1, b2, b3])
    assert o2.shape == (16, 28, 128), o2.shape
    assert jnp.allclose(o2, r2), "Pallas output mismatch vs reference (case 2)"

    # ---- Case 3: Pallas path; genuine (size>1) tiling expressed as extra
    # static stores, concatenation along the last (lane) axis.
    #   repeats -> (3,1), (1,1); output event shape (48, 384)
    m3 = BroadcastCat([(16, 256), (48, 128)], dim=1)
    c1 = jax.random.normal(ks[6], (8, 16, 256), dtype=jnp.float32)
    c2 = jax.random.normal(ks[7], (8, 48, 128), dtype=jnp.float32)
    o3 = jax.block_until_ready(m3([c1, c2]))
    r3 = _reference(m3, [c1, c2])
    assert o3.shape == (8, 48, 384), o3.shape
    assert jnp.allclose(o3, r3), "Pallas output mismatch vs reference (case 3)"

    print("KERNEL_OK")
</pallas_src>

<mosaic_0001>
module attributes {stable_mosaic.version = 11 : i64} {
  func.func @kernel(%arg0: i32, %arg1: memref<4x8x128xf32, #tpu.memory_space<vmem>>, %arg2: memref<4x4x64xf32, #tpu.memory_space<vmem>>, %arg3: memref<4x16x1xf32, #tpu.memory_space<vmem>>, %arg4: memref<4x28x128xf32, #tpu.memory_space<vmem>>) attributes {dimension_semantics = [#tpu.dimension_semantics<parallel>], iteration_bounds = array<i64: 4>, scalar_prefetch = 0 : i64, scratch_operands = 0 : i64, tpu.core_type = #tpu.core_type<tc>, window_params = [{transform_indices = @transform_0, window_bounds = array<i64: 4, 8, 128>}, {transform_indices = @transform_1, window_bounds = array<i64: 4, 4, 64>}, {transform_indices = @transform_2, window_bounds = array<i64: 4, 16, 1>}, {transform_indices = @transform_3, window_bounds = array<i64: 4, 28, 128>}]} {
    %c0 = arith.constant 0 : index
    %c0_0 = arith.constant 0 : index
    %c0_1 = arith.constant 0 : index
    %0 = vector.load %arg1[%c0, %c0_0, %c0_1] : memref<4x8x128xf32, #tpu.memory_space<vmem>>, vector<4x8x128xf32>
    %c0_2 = arith.constant 0 : index
    %c0_3 = arith.constant 0 : index
    %c0_4 = arith.constant 0 : index
    %1 = vector.load %arg4[%c0_2, %c0_3, %c0_4] : memref<4x28x128xf32, #tpu.memory_space<vmem>>, vector<4x8x128xf32>
    tpu.vector_store %arg4[%c0_2, %c0_3, %c0_4], %0 {strides = array<i32>} : memref<4x28x128xf32, #tpu.memory_space<vmem>>, vector<4x8x128xf32>,
    %c0_5 = arith.constant 0 : index
    %c0_6 = arith.constant 0 : index
    %c0_7 = arith.constant 0 : index
    %2 = vector.load %arg2[%c0_5, %c0_6, %c0_7] : memref<4x4x64xf32, #tpu.memory_space<vmem>>, vector<4x4x64xf32>
    %c0_8 = arith.constant 0 : index
    %c8 = arith.constant 8 : index
    %c0_9 = arith.constant 0 : index
    %3 = vector.load %arg4[%c0_8, %c8, %c0_9] : memref<4x28x128xf32, #tpu.memory_space<vmem>>, vector<4x4x64xf32>
    tpu.vector_store %arg4[%c0_8, %c8, %c0_9], %2 {strides = array<i32>} : memref<4x28x128xf32, #tpu.memory_space<vmem>>, vector<4x4x64xf32>,
    %c0_10 = arith.constant 0 : index
    %c8_11 = arith.constant 8 : index
    %c64 = arith.constant 64 : index
    %4 = vector.load %arg4[%c0_10, %c8_11, %c64] : memref<4x28x128xf32, #tpu.memory_space<vmem>>, vector<4x4x64xf32>
    tpu.vector_store %arg4[%c0_10, %c8_11, %c64], %2 {strides = array<i32>} : memref<4x28x128xf32, #tpu.memory_space<vmem>>, vector<4x4x64xf32>,
    %c0_12 = arith.constant 0 : index
    %c0_13 = arith.constant 0 : index
    %c0_14 = arith.constant 0 : index
    %5 = vector.load %arg3[%c0_12, %c0_13, %c0_14] : memref<4x16x1xf32, #tpu.memory_space<vmem>>, vector<4x16x1xf32>
    %6 = vector.shape_cast %5 : vector<4x16x1xf32> to vector<4x16x1xf32>
    %7 = vector.broadcast %6 : vector<4x16x1xf32> to vector<4x16x128xf32>
    %c0_15 = arith.constant 0 : index
    %c12 = arith.constant 12 : index
    %c0_16 = arith.constant 0 : index
    %8 = vector.load %arg4[%c0_15, %c12, %c0_16] : memref<4x28x128xf32, #tpu.memory_space<vmem>>, vector<4x16x128xf32>
    tpu.vector_store %arg4[%c0_15, %c12, %c0_16], %7 {strides = array<i32>} : memref<4x28x128xf32, #tpu.memory_space<vmem>>, vector<4x16x128xf32>,
    return
  }
  func.func @transform_0(%arg0: i32) -> (i32, i32, i32) {
    %c0_i32 = arith.constant 0 : i32
    %c0_i32_0 = arith.constant 0 : i32
    %c0_i32_1 = arith.constant 0 : i32
    return %arg0, %c0_i32, %c0_i32_0 : i32, i32, i32
  }
  func.func @transform_1(%arg0: i32) -> (i32, i32, i32) {
    %c0_i32 = arith.constant 0 : i32
    %c0_i32_0 = arith.constant 0 : i32
    %c0_i32_1 = arith.constant 0 : i32
    return %arg0, %c0_i32, %c0_i32_0 : i32, i32, i32
  }
  func.func @transform_2(%arg0: i32) -> (i32, i32, i32) {
    %c0_i32 = arith.constant 0 : i32
    %c0_i32_0 = arith.constant 0 : i32
    %c0_i32_1 = arith.constant 0 : i32
    return %arg0, %c0_i32, %c0_i32_0 : i32, i32, i32
  }
  func.func @transform_3(%arg0: i32) -> (i32, i32, i32) {
    %c0_i32 = arith.constant 0 : i32
    %c0_i32_0 = arith.constant 0 : i32
    %c0_i32_1 = arith.constant 0 : i32
    return %arg0, %c0_i32, %c0_i32_0 : i32, i32, i32
  }
}

</mosaic_0001>

<bundles_post_ra>
// kernel: tpu_custom_call.1
= control target key start
LH: loop header
LB: loop body
LE: loop exit
PB: predicated region body
PF: predicated region fallthrough
CT: control target
= control target key end

     0   :  { %s460_s12 = smov 0   ;;  %s519_s0 = inlined_call_operand.vmem [shape: f32[16,8,128], index: 0, kind: input, shape index: {}]   ;;  %s520_s1 = inlined_call_operand.vmem [shape: f32[16,4,64], index: 1, kind: input, shape index: {}]   ;;  %s521_s2 = inlined_call_operand.vmem [shape: f32[16,16,1], index: 2, kind: input, shape index: {}]   ;;  %s522_s3 = inlined_call_operand.vmem [shape: f32[16,28,128], index: 3, kind: output, shape index: {}]  }
   0x1 LB: > { %s399_s13 = sadd.s32 4294967295, %s436_s12   ;;  %p403_p0 = scmp.ge.s32.totalorder %s436_s12, 1  ;;  %s436_s12 = sphi %s460_s12, %s13_s12  }
   0x2   : > { %p161_p1 = scmp.lt.s32.totalorder %s436_s12, 5 }
   0x4   : > { %p162_p2 = pnand %p403_p0, %p161_p1 }
   0x5   : > { %s404_s14 = sshll.u32 (!%p162_p2), %s399_s13, 2  ;;  %v438_v0 = vmov (!%p162_p2), 0   ;;  %vm235_vm0 = vcmask (!%p162_p2), 519168   ;;  %s439_s4 = smov (!%p162_p2), 64   ;;  %vm256_vm1 = vcmask (!%p162_p2), 1043968  }
   0x6   : > { %165 = sbr.rel (%p162_p2) target bundleno = 166 (0xa6), region = 32  ;;  %429 = vset.pattern.permute.xlu1 (!%p162_p2), %v438_v0  ;;  %428 = vset.pattern.permute.xlu0 (!%p162_p2), %v438_v0  ;;  %p198_p3 = scmp.lt.s32.totalorder (!%p162_p2), %s404_s14, 15 }
   0xd   : > { %s524_s14 = smov (!%p198_p3, %s404_s14), 15 }
   0xe   : > { %s416_s15 = sshll.u32 %s524_s14, 4  ;;  %s417_s19 = sshll.u32 %s524_s14, 5 }
   0xf   : > { %s471_s18 = scalar_lea.vmem %s521_s2, %s416_s15  ;;  %s405_s20 = sshll.u32 %s524_s14, 3 }
  0x10   : > { %v263_v1 = vld [vmem:[%s471_s18 + $0x10] sm:$0xff]  ;;  %v261_v2 = vld [vmem:[%s471_s18] sm:$0xff]  ;;  %s407_s21 = sshll.u32 %s524_s14, 2  ;;  %s201_s24 = scalar_lea.vmem %s519_s0, %s405_s20  ;;  %v264_v3 = vld [vmem:[%s471_s18 + $0x18] sm:$0xff] }
  0x11   : > { %281 = vperm.xlu1 %429, %v263_v1   ;;  %271 = vperm.xlu0 %428, %v261_v2   ;;  %v262_v4 = vld [vmem:[%s471_s18 + $0x8] sm:$0xff]  ;;  %s207_s27 = scalar_lea.vmem %s520_s1, %s407_s21  ;;  %s486_s30 = scalar_lea.vmem %s522_s3, %s417_s19  ;;  %v223_v5 = vld [vmem:[%s201_s24] sm:$0xff]  ;;  %v225_v7 = vld [vmem:[%s201_s24 + $0x10] sm:$0xff] }
  0x12   : > { %v224_v6 = vld [vmem:[%s201_s24 + $0x8] sm:$0xff]  ;;  %v226_v8 = vld [vmem:[%s201_s24 + $0x18] sm:$0xff]  ;;  %227 = vst [vmem:[%s486_s30] sm:$0xff] %v223_v5  ;;  %229 = vst [vmem:[%s486_s30 + $0x40] sm:$0xff] %v225_v7 }
  0x13   : > { %228 = vst [vmem:[%s486_s30 + $0x20] sm:$0xff] %v224_v6  ;;  %230 = vst [vmem:[%s486_s30 + $0x60] sm:$0xff] %v226_v8  ;;  %v232_v9 = vld [vmem:[%s207_s27 + $0x4] sm:$0xf]  ;;  %v231_v10 = vld [vmem:[%s207_s27] sm:$0xf] }
  0x14   : > { %v234_v11 = vld [vmem:[%s207_s27 + $0xc] sm:$0xf]  ;;  %237 = vst.msk [vmem:[%s486_s30 + $0x28] sm:$0xf] %vm235_vm0, %v232_v9  ;;  %236 = vst.msk [vmem:[%s486_s30 + $0x8] sm:$0xf] %vm235_vm0, %v231_v10 }
  0x15   : > { %286 = vperm.xlu1 %429, %v264_v3   ;;  %276 = vperm.xlu0 %428, %v262_v4   ;;  %239 = vst.msk [vmem:[%s486_s30 + $0x68] sm:$0xf] %vm235_vm0, %v234_v11  ;;  %v233_v12 = vld [vmem:[%s207_s27 + $0x8] sm:$0xf]  ;;  %v265_v14 = vld [vmem:[%s471_s18 + $0x20] sm:$0xff]  ;;  %v268_v15 = vld [vmem:[%s471_s18 + $0x38] sm:$0xff] }
  0x16   : > { %v266_v13 = vld [vmem:[%s471_s18 + $0x28] sm:$0xff]  ;;  %238 = vst.msk [vmem:[%s486_s30 + $0x48] sm:$0xf] %vm235_vm0, %v233_v12  ;;  %v267_v16 = vld [vmem:[%s471_s18 + $0x30] sm:$0xff] }
  0x19   : > { %296 = vperm.xlu1 %429, %v266_v13   ;;  %291 = vperm.xlu0 %428, %v265_v14  }
  0x1d   : > { %306 = vperm.xlu1 %429, %v268_v15   ;;  %301 = vperm.xlu0 %428, %v267_v16  }
  0x21   : > { %246 = vrot.lane.b32.xlu1 %v232_v9, %s439_s4  ;;  %244 = vrot.lane.b32.xlu0 %v231_v10, %s439_s4 }
  0x25   : > { %250 = vrot.lane.b32.xlu1 %v234_v11, %s439_s4  ;;  %248 = vrot.lane.b32.xlu0 %v233_v12, %s439_s4 }
  0x90   : > { %v282_v17 = vpop.permute.xlu1 %281  ;;  %v272_v18 = vpop.permute.xlu0 %271 }
  0x91   : > { %311 = vst [vmem:[%s486_s30 + $0x2c] sm:$0xff] %v282_v17  ;;  %309 = vst [vmem:[%s486_s30 + $0xc] sm:$0xff] %v272_v18 }
  0x94   : > { %v287_v19 = vpop.permute.xlu1 %286  ;;  %v277_v20 = vpop.permute.xlu0 %276 }
  0x95   : > { %312 = vst [vmem:[%s486_s30 + $0x34] sm:$0xff] %v287_v19  ;;  %310 = vst [vmem:[%s486_s30 + $0x14] sm:$0xff] %v277_v20 }
  0x98   : > { %v297_v21 = vpop.permute.xlu1 %296  ;;  %v292_v22 = vpop.permute.xlu0 %291 }
  0x99   : > { %314 = vst [vmem:[%s486_s30 + $0x54] sm:$0xff] %v297_v21  ;;  %313 = vst [vmem:[%s486_s30 + $0x4c] sm:$0xff] %v292_v22 }
  0x9c   : > { %v307_v23 = vpop.permute.xlu1 %306  ;;  %v302_v24 = vpop.permute.xlu0 %301 }
  0x9d   : > { %316 = vst [vmem:[%s486_s30 + $0x74] sm:$0xff] %v307_v23  ;;  %315 = vst [vmem:[%s486_s30 + $0x6c] sm:$0xff] %v302_v24 }
  0xa0   : > { %v247_v25 = vpop.permute.xlu1 %246  ;;  %v245_v26 = vpop.permute.xlu0 %244 }
  0xa1   : > { %258 = vst.msk [vmem:[%s486_s30 + $0x28] sm:$0xf] %vm256_vm1, %v247_v25  ;;  %257 = vst.msk [vmem:[%s486_s30 + $0x8] sm:$0xf] %vm256_vm1, %v245_v26 }
  0xa4   : > { %v251_v27 = vpop.permute.xlu1 %250  ;;  %v249_v28 = vpop.permute.xlu0 %248 }
  0xa5   : > { %260 = vst.msk [vmem:[%s486_s30 + $0x68] sm:$0xf] %vm256_vm1, %v251_v27  ;;  %259 = vst.msk [vmem:[%s486_s30 + $0x48] sm:$0xf] %vm256_vm1, %v249_v28 }
  0xa6 PF: > { %s13_s12 = sadd.s32 1, %s436_s12  }
  0xa7   : > { %p10_p4 = scmp.ge.s32.totalorder %s13_s12, 6  }
  0xa9   :  { %12 = sbr.rel (!%p10_p4) target bundleno = 1 (0x1), region = 68 }

</bundles_post_ra>
